<compile_context>
chip_gen: v5e
topology: v5e:2x2
jax: 0.10.0
libtpu: 0.0.40
codegen_flags: <defaults>
</compile_context>

<pallas_src>
import jax
import jax.numpy as jnp
from jax.experimental import pallas as pl
from jax.experimental.pallas import tpu as pltpu

LN_EPS = 1e-5   # nn.LayerNorm default
LANE = 128      # vreg lane width
SUBLANE = 8     # vreg sublane height (f32)


def _round_up(n, m):
    return ((n + m - 1) // m) * m


def classifier_kernel(x_ref, gamma_ref, beta_ref, w_ref, b_ref, o_ref):
    """One (TB, F) batch tile: LayerNorm -> Dropout(eval) -> Linear."""
    # ---- LayerNorm: single-pass statistics in f32 (var = E[x^2] - E[x]^2). ----
    x32 = x_ref[...].astype(jnp.float32)
    mean = jnp.mean(x32, axis=-1, keepdims=True)              # (TB, 1)
    mean_sq = jnp.mean(x32 * x32, axis=-1, keepdims=True)     # (TB, 1)
    var = jnp.maximum(mean_sq - mean * mean, 0.0)             # clamp cancellation
    inv_std = jax.lax.rsqrt(var + LN_EPS)                     # (TB, 1)

    gamma32 = gamma_ref[...].astype(jnp.float32)              # (1, F)
    beta32 = beta_ref[...].astype(jnp.float32)                # (1, F)
    # Fold gamma into the scale: y = x*(inv_std*gamma) + (beta - mean*inv_std*gamma).
    scale = inv_std * gamma32                                 # (TB, F)
    shift = beta32 - (mean * inv_std) * gamma32               # (TB, F)
    y = x32 * scale + shift

    # ---- Dropout(0.3): inference/eval path == identity. ----
    # TODO(synk): training-mode dropout (pltpu.prng_random_bits mask + 1/(1-p) scale).

    # ---- Linear: (TB, F) @ (F, C_pad) + (1, C_pad), f32 MXU accumulation. ----
    out = jnp.dot(y.astype(w_ref.dtype), w_ref[...],
                  preferred_element_type=jnp.float32)
    out = out + b_ref[...].astype(jnp.float32)
    o_ref[...] = out.astype(o_ref.dtype)          # lane-dense, full-width store


def reference(x, gamma, beta, w_t, bias):
    """Pure-JAX f32 reference (LayerNorm -> identity dropout -> Linear)."""
    x32 = x.astype(jnp.float32)
    mean = jnp.mean(x32, axis=-1, keepdims=True)
    var = jnp.mean((x32 - mean) ** 2, axis=-1, keepdims=True)
    y = (x32 - mean) * jax.lax.rsqrt(var + LN_EPS) * gamma.astype(jnp.float32) \
        + beta.astype(jnp.float32)
    return y @ w_t.astype(jnp.float32) + bias.astype(jnp.float32)


def simple_classifier(x, gamma, beta, w_t, bias, *, block_b=512,
                      vmem_budget_bytes=40 << 20, vmem_limit_bytes=48 << 20,
                      use_pallas=None):
    """x: (B, F); gamma/beta: (1, F); w_t: (F, C); bias: (1, C) -> (B, C).

    block_b:            upper bound on rows per grid step.
    vmem_budget_bytes:   budget used to cap TB (safe vs. v7x's 64 MiB physical VMEM).
    vmem_limit_bytes:    scoped-VMEM limit handed to Mosaic (raises v5e's 16 MiB default,
                         stays below v7x's 64 MiB physical).
    use_pallas:          None = auto-dispatch (plain XLA below a work threshold,
                         where a single grid step + call overhead dominates).
    """
    B, F = x.shape
    C = w_t.shape[1]

    if use_pallas is None:
        use_pallas = (B * F) >= (1 << 16)
    if not use_pallas:
        return reference(x, gamma, beta, w_t, bias).astype(x.dtype)

    C_pad = _round_up(C, LANE)        # lane-dense output width (exactly 128 for small C;
                                      # do NOT pad to 256 on v6e/v7x - mem-bound kernel).

    # ---- VMEM-aware batch-tile selection (no batch padding of x in HBM). ----
    x_bytes = x.dtype.itemsize
    w_bytes = w_t.dtype.itemsize
    out_bytes = x.dtype.itemsize
    resident = 2 * F * C_pad * w_bytes + 4 * (2 * F + C_pad) * 4    # W (<=2 bufs) + ln/bias params
    per_row = 2 * F * x_bytes + 2 * C_pad * out_bytes + 3 * F * 4   # x/out dbl-buf + f32 LN temps
    avail = max(vmem_budget_bytes - resident, SUBLANE * per_row)
    tb_cap = max(SUBLANE, (avail // per_row) // SUBLANE * SUBLANE)
    tb_cap = min(tb_cap, block_b)

    n_min = 2 if B >= 2 * SUBLANE else 1          # >=2 steps -> both v7x TCs get work
    n = max(pl.cdiv(B, tb_cap), n_min)
    TB = _round_up(pl.cdiv(B, n), SUBLANE)        # minimal (<8 rows/tile) padding
    grid = (pl.cdiv(B, TB),)                      # ragged last tile handled by Pallas

    # Zero-pad only the tiny class dimension of W / bias (padded cols sliced off below).
    w_p = jnp.pad(w_t, ((0, 0), (0, C_pad - C))) if C_pad != C else w_t
    b_p = jnp.pad(bias, ((0, 0), (0, C_pad - C))) if C_pad != C else bias

    flops = 2 * B * F * C_pad + 10 * B * F
    bytes_accessed = (B * F * x_bytes + F * C_pad * w_bytes
                      + (2 * F + C_pad) * 4 + B * C_pad * out_bytes)

    def _resident_spec(shape, single_buffer):
        # Constant index_map: block is VMEM-resident across all grid steps.
        if single_buffer:
            return pl.BlockSpec(shape, lambda i: (0, 0), pipeline_mode=pl.Buffered(1))
        return pl.BlockSpec(shape, lambda i: (0, 0))

    def _call(single_buffer):
        out = pl.pallas_call(
            classifier_kernel,
            out_shape=jax.ShapeDtypeStruct((B, C_pad), x.dtype),
            grid=grid,
            in_specs=[
                pl.BlockSpec((TB, F), lambda i: (i, 0)),          # x: tiles over batch
                _resident_spec((1, F), single_buffer),            # gamma
                _resident_spec((1, F), single_buffer),            # beta
                _resident_spec((F, C_pad), single_buffer),        # W
                _resident_spec((1, C_pad), single_buffer),        # bias
            ],
            out_specs=pl.BlockSpec((TB, C_pad), lambda i: (i, 0)),
            compiler_params=pltpu.CompilerParams(
                dimension_semantics=("parallel",),                # megacore-shardable
                vmem_limit_bytes=vmem_limit_bytes),
            cost_estimate=pl.CostEstimate(
                flops=flops, transcendentals=B, bytes_accessed=bytes_accessed),
        )(x, gamma, beta, w_p, b_p)
        return jax.block_until_ready(out)

    try:
        out = _call(single_buffer=True)
    except Exception:
        # Fallback for Pallas versions without pipeline_mode / Buffered(1) support.
        out = _call(single_buffer=False)

    return out[:, :C]


if __name__ == "__main__":
    B, F, C = 8, 32, 8  # batch, in_features, num_classes

    key = jax.random.PRNGKey(0)
    kx, kw = jax.random.split(key)

    x = jax.random.normal(kx, (B, F), dtype=jnp.float32)

    # LayerNorm params: PyTorch init -> weight=1, bias=0.
    gamma = jnp.ones((1, F), dtype=jnp.float32)
    beta = jnp.zeros((1, F), dtype=jnp.float32)

    # fc: xavier_normal_(weight), zeros_(bias). PyTorch weight is (C, F);
    # we store the transpose (F, C) for the kernel. Xavier std = sqrt(2/(F+C)).
    xavier_std = (2.0 / (F + C)) ** 0.5
    w = jax.random.normal(kw, (C, F), dtype=jnp.float32) * xavier_std
    w_t = w.T  # (F, C)
    bias = jnp.zeros((1, C), dtype=jnp.float32)

    ref = reference(x, gamma, beta, w_t, bias)

    # f32 path: tight numerical check against the f32 reference.
    out = simple_classifier(x, gamma, beta, w_t, bias, use_pallas=True)
    out = jax.block_until_ready(out)
    assert out.shape == (B, C)
    assert jnp.allclose(out, ref, atol=1e-5, rtol=1e-5), "f32 mismatch vs reference"

    # bf16 streaming path (bandwidth-optimised production config): loose tolerance
    # since x / W / output are bf16 (LN stats and accumulation remain f32).
    out_bf16 = simple_classifier(x.astype(jnp.bfloat16), gamma, beta,
                                 w_t.astype(jnp.bfloat16),
                                 bias.astype(jnp.bfloat16), use_pallas=True)
    out_bf16 = jax.block_until_ready(out_bf16)
    assert out_bf16.shape == (B, C)
    assert jnp.allclose(out_bf16.astype(jnp.float32), ref, atol=1e-1, rtol=1e-1), \
        "bf16 mismatch vs reference"

    print("KERNEL_OK")
</pallas_src>

<mosaic_0001>
module attributes {stable_mosaic.version = 11 : i64} {
  func.func @classifier_kernel(%arg0: i32, %arg1: memref<8x32xf32, #tpu.memory_space<vmem>>, %arg2: memref<1x32xf32, #tpu.memory_space<vmem>>, %arg3: memref<1x32xf32, #tpu.memory_space<vmem>>, %arg4: memref<32x128xf32, #tpu.memory_space<vmem>>, %arg5: memref<1x128xf32, #tpu.memory_space<vmem>>, %arg6: memref<8x128xf32, #tpu.memory_space<vmem>>) attributes {dimension_semantics = [#tpu.dimension_semantics<parallel>], iteration_bounds = array<i64: 1>, scalar_prefetch = 0 : i64, scratch_operands = 0 : i64, tpu.core_type = #tpu.core_type<tc>, window_params = [{transform_indices = @transform_0, window_bounds = array<i64: 8, 32>}, {pipeline_mode = #tpu.pipeline_mode<synchronous>, transform_indices = @transform_1, window_bounds = array<i64: 1, 32>}, {pipeline_mode = #tpu.pipeline_mode<synchronous>, transform_indices = @transform_2, window_bounds = array<i64: 1, 32>}, {pipeline_mode = #tpu.pipeline_mode<synchronous>, transform_indices = @transform_3, window_bounds = array<i64: 32, 128>}, {pipeline_mode = #tpu.pipeline_mode<synchronous>, transform_indices = @transform_4, window_bounds = array<i64: 1, 128>}, {transform_indices = @transform_5, window_bounds = array<i64: 8, 128>}]} {
    %c0 = arith.constant 0 : index
    %c0_0 = arith.constant 0 : index
    %0 = vector.load %arg1[%c0, %c0_0] : memref<8x32xf32, #tpu.memory_space<vmem>>, vector<8x32xf32>
    %cst = arith.constant dense<0.000000e+00> : vector<8xf32>
    %1 = vector.multi_reduction <add>, %0, %cst [1] : vector<8x32xf32> to vector<8xf32>
    %2 = vector.shape_cast %1 : vector<8xf32> to vector<8x1xf32>
    %cst_1 = arith.constant 3.200000e+01 : f32
    %3 = vector.broadcast %cst_1 : f32 to vector<8x1xf32>
    %4 = arith.divf %2, %3 : vector<8x1xf32>
    %5 = arith.mulf %0, %0 : vector<8x32xf32>
    %cst_2 = arith.constant dense<0.000000e+00> : vector<8xf32>
    %6 = vector.multi_reduction <add>, %5, %cst_2 [1] : vector<8x32xf32> to vector<8xf32>
    %7 = vector.shape_cast %6 : vector<8xf32> to vector<8x1xf32>
    %cst_3 = arith.constant 3.200000e+01 : f32
    %8 = vector.broadcast %cst_3 : f32 to vector<8x1xf32>
    %9 = arith.divf %7, %8 : vector<8x1xf32>
    %10 = arith.mulf %4, %4 : vector<8x1xf32>
    %11 = arith.subf %9, %10 : vector<8x1xf32>
    %cst_4 = arith.constant 0.000000e+00 : f32
    %12 = vector.broadcast %cst_4 : f32 to vector<8x1xf32>
    %13 = arith.maximumf %11, %12 : vector<8x1xf32>
    %cst_5 = arith.constant 9.99999974E-6 : f32
    %14 = vector.broadcast %cst_5 : f32 to vector<8x1xf32>
    %15 = arith.addf %13, %14 : vector<8x1xf32>
    %16 = math.rsqrt %15 : vector<8x1xf32>
    %c0_6 = arith.constant 0 : index
    %c0_7 = arith.constant 0 : index
    %17 = vector.load %arg2[%c0_6, %c0_7] : memref<1x32xf32, #tpu.memory_space<vmem>>, vector<1x32xf32>
    %c0_8 = arith.constant 0 : index
    %c0_9 = arith.constant 0 : index
    %18 = vector.load %arg3[%c0_8, %c0_9] : memref<1x32xf32, #tpu.memory_space<vmem>>, vector<1x32xf32>
    %19 = vector.broadcast %16 : vector<8x1xf32> to vector<8x32xf32>
    %20 = vector.broadcast %17 : vector<1x32xf32> to vector<8x32xf32>
    %21 = arith.mulf %19, %20 : vector<8x32xf32>
    %22 = arith.mulf %4, %16 : vector<8x1xf32>
    %23 = vector.broadcast %22 : vector<8x1xf32> to vector<8x32xf32>
    %24 = vector.broadcast %17 : vector<1x32xf32> to vector<8x32xf32>
    %25 = arith.mulf %23, %24 : vector<8x32xf32>
    %26 = vector.broadcast %18 : vector<1x32xf32> to vector<8x32xf32>
    %27 = arith.subf %26, %25 : vector<8x32xf32>
    %28 = arith.mulf %0, %21 : vector<8x32xf32>
    %29 = arith.addf %28, %27 : vector<8x32xf32>
    %c0_10 = arith.constant 0 : index
    %c0_11 = arith.constant 0 : index
    %30 = vector.load %arg4[%c0_10, %c0_11] : memref<32x128xf32, #tpu.memory_space<vmem>>, vector<32x128xf32>
    %cst_12 = arith.constant dense<0.000000e+00> : vector<8x128xf32>
    %31 = tpu.matmul %29, %30, %cst_12 {dimension_numbers = #tpu.dot_dimension_numbers<[1], [0], [0], [1], [0, 0, 1, 1], [], []>} : vector<8x32xf32>, vector<32x128xf32>, vector<8x128xf32> -> vector<8x128xf32>
    %c0_13 = arith.constant 0 : index
    %c0_14 = arith.constant 0 : index
    %32 = vector.load %arg5[%c0_13, %c0_14] : memref<1x128xf32, #tpu.memory_space<vmem>>, vector<1x128xf32>
    %33 = vector.broadcast %32 : vector<1x128xf32> to vector<8x128xf32>
    %34 = arith.addf %31, %33 : vector<8x128xf32>
    %c0_15 = arith.constant 0 : index
    %c0_16 = arith.constant 0 : index
    %35 = vector.load %arg6[%c0_15, %c0_16] : memref<8x128xf32, #tpu.memory_space<vmem>>, vector<8x128xf32>
    tpu.vector_store %arg6[%c0_15, %c0_16], %34 {strides = array<i32>} : memref<8x128xf32, #tpu.memory_space<vmem>>, vector<8x128xf32>,
    return
  }
  func.func @transform_0(%arg0: i32) -> (i32, i32) {
    %c0_i32 = arith.constant 0 : i32
    %c0_i32_0 = arith.constant 0 : i32
    return %arg0, %c0_i32 : i32, i32
  }
  func.func @transform_1(%arg0: i32) -> (i32, i32) {
    %c0_i32 = arith.constant 0 : i32
    %c0_i32_0 = arith.constant 0 : i32
    %c0_i32_1 = arith.constant 0 : i32
    return %c0_i32, %c0_i32_0 : i32, i32
  }
  func.func @transform_2(%arg0: i32) -> (i32, i32) {
    %c0_i32 = arith.constant 0 : i32
    %c0_i32_0 = arith.constant 0 : i32
    %c0_i32_1 = arith.constant 0 : i32
    return %c0_i32, %c0_i32_0 : i32, i32
  }
  func.func @transform_3(%arg0: i32) -> (i32, i32) {
    %c0_i32 = arith.constant 0 : i32
    %c0_i32_0 = arith.constant 0 : i32
    %c0_i32_1 = arith.constant 0 : i32
    return %c0_i32, %c0_i32_0 : i32, i32
  }
  func.func @transform_4(%arg0: i32) -> (i32, i32) {
    %c0_i32 = arith.constant 0 : i32
    %c0_i32_0 = arith.constant 0 : i32
    %c0_i32_1 = arith.constant 0 : i32
    return %c0_i32, %c0_i32_0 : i32, i32
  }
  func.func @transform_5(%arg0: i32) -> (i32, i32) {
    %c0_i32 = arith.constant 0 : i32
    %c0_i32_0 = arith.constant 0 : i32
    return %arg0, %c0_i32 : i32, i32
  }
}

module attributes {stable_mosaic.version = 11 : i64} {
  func.func @classifier_kernel(%arg0: i32, %arg1: memref<8x32xf32, #tpu.memory_space<vmem>>, %arg2: memref<1x32xf32, #tpu.memory_space<vmem>>, %arg3: memref<1x32xf32, #tpu.memory_space<vmem>>, %arg4: memref<32x128xf32, #tpu.memory_space<vmem>>, %arg5: memref<1x128xf32, #tpu.memory_space<vmem>>, %arg6: memref<8x128xf32, #tpu.memory_space<vmem>>) attributes {dimension_semantics = [#tpu.dimension_semantics<parallel>], iteration_bounds = array<i64: 1>, scalar_prefetch = 0 : i64, scratch_operands = 0 : i64, tpu.core_type = #tpu.core_type<tc>, window_params = [{transform_indices = @transform_0, window_bounds = array<i64: 8, 32>}, {pipeline_mode = #tpu.pipeline_mode<synchronous>, transform_indices = @transform_1, window_bounds = array<i64: 1, 32>}, {pipeline_mode = #tpu.pipeline_mode<synchronous>, transform_indices = @transform_2, window_bounds = array<i64: 1, 32>}, {pipeline_mode = #tpu.pipeline_mode<synchronous>, transform_indices = @transform_3, window_bounds = array<i64: 32, 128>}, {pipeline_mode = #tpu.pipeline_mode<synchronous>, transform_indices = @transform_4, window_bounds = array<i64: 1, 128>}, {transform_indices = @transform_5, window_bounds = array<i64: 8, 128>}]} {
    %c0 = arith.constant 0 : index
    %c0_0 = arith.constant 0 : index
    %0 = vector.load %arg1[%c0, %c0_0] : memref<8x32xf32, #tpu.memory_space<vmem>>, vector<8x32xf32>
    %cst = arith.constant dense<0.000000e+00> : vector<8xf32>
    %1 = vector.multi_reduction <add>, %0, %cst [1] : vector<8x32xf32> to vector<8xf32>
    %2 = vector.shape_cast %1 : vector<8xf32> to vector<8x1xf32>
    %cst_1 = arith.constant 3.200000e+01 : f32
    %3 = vector.broadcast %cst_1 : f32 to vector<8x1xf32>
    %4 = arith.divf %2, %3 : vector<8x1xf32>
    %5 = arith.mulf %0, %0 : vector<8x32xf32>
    %cst_2 = arith.constant dense<0.000000e+00> : vector<8xf32>
    %6 = vector.multi_reduction <add>, %5, %cst_2 [1] : vector<8x32xf32> to vector<8xf32>
    %7 = vector.shape_cast %6 : vector<8xf32> to vector<8x1xf32>
    %cst_3 = arith.constant 3.200000e+01 : f32
    %8 = vector.broadcast %cst_3 : f32 to vector<8x1xf32>
    %9 = arith.divf %7, %8 : vector<8x1xf32>
    %10 = arith.mulf %4, %4 : vector<8x1xf32>
    %11 = arith.subf %9, %10 : vector<8x1xf32>
    %cst_4 = arith.constant 0.000000e+00 : f32
    %12 = vector.broadcast %cst_4 : f32 to vector<8x1xf32>
    %13 = arith.maximumf %11, %12 : vector<8x1xf32>
    %cst_5 = arith.constant 9.99999974E-6 : f32
    %14 = vector.broadcast %cst_5 : f32 to vector<8x1xf32>
    %15 = arith.addf %13, %14 : vector<8x1xf32>
    %16 = math.rsqrt %15 : vector<8x1xf32>
    %c0_6 = arith.constant 0 : index
    %c0_7 = arith.constant 0 : index
    %17 = vector.load %arg2[%c0_6, %c0_7] : memref<1x32xf32, #tpu.memory_space<vmem>>, vector<1x32xf32>
    %c0_8 = arith.constant 0 : index
    %c0_9 = arith.constant 0 : index
    %18 = vector.load %arg3[%c0_8, %c0_9] : memref<1x32xf32, #tpu.memory_space<vmem>>, vector<1x32xf32>
    %19 = vector.broadcast %16 : vector<8x1xf32> to vector<8x32xf32>
    %20 = vector.broadcast %17 : vector<1x32xf32> to vector<8x32xf32>
    %21 = arith.mulf %19, %20 : vector<8x32xf32>
    %22 = arith.mulf %4, %16 : vector<8x1xf32>
    %23 = vector.broadcast %22 : vector<8x1xf32> to vector<8x32xf32>
    %24 = vector.broadcast %17 : vector<1x32xf32> to vector<8x32xf32>
    %25 = arith.mulf %23, %24 : vector<8x32xf32>
    %26 = vector.broadcast %18 : vector<1x32xf32> to vector<8x32xf32>
    %27 = arith.subf %26, %25 : vector<8x32xf32>
    %28 = arith.mulf %0, %21 : vector<8x32xf32>
    %29 = arith.addf %28, %27 : vector<8x32xf32>
    %c0_10 = arith.constant 0 : index
    %c0_11 = arith.constant 0 : index
    %30 = vector.load %arg4[%c0_10, %c0_11] : memref<32x128xf32, #tpu.memory_space<vmem>>, vector<32x128xf32>
    %cst_12 = arith.constant dense<0.000000e+00> : vector<8x128xf32>
    %31 = tpu.matmul %29, %30, %cst_12 {dimension_numbers = #tpu.dot_dimension_numbers<[1], [0], [0], [1], [0, 0, 1, 1], [], []>} : vector<8x32xf32>, vector<32x128xf32>, vector<8x128xf32> -> vector<8x128xf32>
    %c0_13 = arith.constant 0 : index
    %c0_14 = arith.constant 0 : index
    %32 = vector.load %arg5[%c0_13, %c0_14] : memref<1x128xf32, #tpu.memory_space<vmem>>, vector<1x128xf32>
    %33 = vector.broadcast %32 : vector<1x128xf32> to vector<8x128xf32>
    %34 = arith.addf %31, %33 : vector<8x128xf32>
    %c0_15 = arith.constant 0 : index
    %c0_16 = arith.constant 0 : index
    %35 = vector.load %arg6[%c0_15, %c0_16] : memref<8x128xf32, #tpu.memory_space<vmem>>, vector<8x128xf32>
    tpu.vector_store %arg6[%c0_15, %c0_16], %34 {strides = array<i32>} : memref<8x128xf32, #tpu.memory_space<vmem>>, vector<8x128xf32>,
    return
  }
  func.func @transform_0(%arg0: i32) -> (i32, i32) {
    %c0_i32 = arith.constant 0 : i32
    %c0_i32_0 = arith.constant 0 : i32
    return %arg0, %c0_i32 : i32, i32
  }
  func.func @transform_1(%arg0: i32) -> (i32, i32) {
    %c0_i32 = arith.constant 0 : i32
    %c0_i32_0 = arith.constant 0 : i32
    %c0_i32_1 = arith.constant 0 : i32
    return %c0_i32, %c0_i32_0 : i32, i32
  }
  func.func @transform_2(%arg0: i32) -> (i32, i32) {
    %c0_i32 = arith.constant 0 : i32
    %c0_i32_0 = arith.constant 0 : i32
    %c0_i32_1 = arith.constant 0 : i32
    return %c0_i32, %c0_i32_0 : i32, i32
  }
  func.func @transform_3(%arg0: i32) -> (i32, i32) {
    %c0_i32 = arith.constant 0 : i32
    %c0_i32_0 = arith.constant 0 : i32
    %c0_i32_1 = arith.constant 0 : i32
    return %c0_i32, %c0_i32_0 : i32, i32
  }
  func.func @transform_4(%arg0: i32) -> (i32, i32) {
    %c0_i32 = arith.constant 0 : i32
    %c0_i32_0 = arith.constant 0 : i32
    %c0_i32_1 = arith.constant 0 : i32
    return %c0_i32, %c0_i32_0 : i32, i32
  }
  func.func @transform_5(%arg0: i32) -> (i32, i32) {
    %c0_i32 = arith.constant 0 : i32
    %c0_i32_0 = arith.constant 0 : i32
    return %arg0, %c0_i32 : i32, i32
  }
}

</mosaic_0001>

<bundles_post_ra>
// kernel: tpu_custom_call.1
= control target key start
LH: loop header
LB: loop body
LE: loop exit
PB: predicated region body
PF: predicated region fallthrough
CT: control target
= control target key end

     0   :  { %10 = vsyncpa [#allocation3], 0  ;;  %s335_s0 = inlined_call_operand.hbm [shape: f32[8,32], index: 0, kind: input, shape index: {}]   ;;  %s336_s1 = inlined_call_operand.hbm [shape: f32[1,32], index: 1, kind: input, shape index: {}]   ;;  %s337_s2 = inlined_call_operand.vmem [shape: f32[1,32], index: 2, kind: input, shape index: {}]   ;;  %s338_s3 = inlined_call_operand.hbm [shape: f32[32,128], index: 3, kind: input, shape index: {}]   ;;  %s339_s4 = inlined_call_operand.vmem [shape: f32[1,128], index: 4, kind: input, shape index: {}]   ;;  %s340_s5 = inlined_call_operand.hbm [shape: f32[8,128], index: 5, kind: output, shape index: {}]  }
   0x1   :  { %11 = vsyncpa [#allocation6], 0  ;;  %s29_s20 = sshll.u32 %s336_s1, 4  ;;  %s30_s20 = int_to_ptr.hbm [resolvable:$true] %s29_s20 }
   0x2   :  { %12 = vsyncpa [#allocation4], 0  ;;  %s277_s21 = smov [#allocation5]   ;;  %s18_s25 = sshll.u32 %s335_s0, 4  ;;  %s19_s25 = int_to_ptr.hbm [resolvable:$true] %s18_s25 }
   0x3   :  { %s31_s22 = sshll.u32 %s277_s21, 4  ;;  %s278_s26 = smov [#allocation2]   ;;  %s32_s22 = int_to_ptr.vmem [resolvable:$true] %s31_s22 }
   0x4   :  { %34 = dma.hbm_to_vmem [thread:$0]  %s30_s20, 16, %s32_s22, [#allocation6]  }
   0x5   :  { %s20_s27 = sshll.u32 %s278_s26, 4  ;;  %s41_s30 = sshll.u32 %s338_s3, 4  ;;  %s21_s27 = int_to_ptr.vmem [resolvable:$true] %s20_s27  ;;  %s42_s30 = int_to_ptr.hbm [resolvable:$true] %s41_s30 }
   0x6   :  { %23 = dma.hbm_to_vmem [thread:$0]  %s19_s25, 128, %s21_s27, [#allocation3]  }
   0x7   :  { %s279_s1 = smov [#allocation7]   ;;  %s280_s7 = smov 128  }
   0x8   :  { %s43_s6 = sshll.u32 %s279_s1, 4  ;;  %s281_s8 = smov 8   ;;  %s44_s6 = int_to_ptr.vmem [resolvable:$true] %s43_s6 }
   0x9   :  { %49 = dma.hbm_to_vmem [thread:$0]  %s42_s30, 512, %s44_s6, [#allocation6], %s280_s7, %s280_s7, %s281_s8  }
   0xa   :  { %271 = dma.done.wait [#allocation3], 128  }
   0xb   :  { %272 = vsyncadd [#allocation3], 4294967168 }
   0xc   :  { %273 = dma.done.wait [#allocation6], 528  }
   0xd   :  { %274 = vsyncadd [#allocation6], 4294966768  ;;  %vm65_vm0 = vcmask 261120   ;;  %v64_v0 = vld [vmem:[#allocation2] sm:$0xff]  ;;  %v282_v4 = vmov 32.0   ;;  %v111_v14 = vld [vmem:[#allocation7 + $0x8] sm:$0xff] }
   0xe   :  { %v66_v1 = vsel %vm65_vm0, %v64_v0, 0.0  ;;  %v77_v2 = vmul.f32 %v64_v0, %v64_v0  ;;  %171 = vrcp.f32 %v282_v4  ;;  %v113_v11 = vld [vmem:[#allocation7 + $0x18] sm:$0xff]  ;;  %v112_v12 = vld [vmem:[#allocation7 + $0x10] sm:$0xff]  ;;  %v110_v15 = vld [vmem:[#allocation7] sm:$0xff]  ;;  %s283_s11 = smov [#allocation8]   ;;  %s149_s15 = sshll.u32 %s340_s5, 4  ;;  %s150_s15 = int_to_ptr.hbm [resolvable:$true] %s149_s15 }
   0xf   :  { %67 = vadd.xlane.f32.xlu0 %v66_v1  ;;  %133 = vmatpush.msra.mxu0 %v113_v11  ;;  %v168_v28 = vld [vmem:[#allocation5] ss:$0 sm:$0xff]  ;;  %v169_v33 = vld [vmem:[%s337_s2] ss:$0 sm:$0xff]  ;;  %s147_s12 = sshll.u32 %s283_s11, 4  ;;  %s148_s12 = int_to_ptr.vmem [resolvable:$true] %s147_s12 }
  0x10   :  { %v78_v3 = vsel %vm65_vm0, %v77_v2, 0.0  ;;  %v170_v38 = vld [vmem:[%s339_s4] ss:$0 sm:$0xff] }
  0x11   :  { %134 = vmatpush.msra.mxu0 %v112_v12 }
  0x13   :  { %135 = vmatpush.msra.mxu0 %v111_v14 }
  0x14   :  { %v172_v5 = vpop.eup %171 }
  0x15   :  { %v70_v6 = vmul.f32 32.0, %v172_v5  ;;  %vm74_vm1 = vweird.f32 %v172_v5  ;;  %136 = vmatpush.msra.mxu0 %v110_v15 }
  0x17   :  { %79 = vadd.xlane.f32.xlu0 %v78_v3  ;;  %v71_v7 = vsub.f32 1.0, %v70_v6 }
  0x19   :  { %v72_v8 = vmul.f32 %v172_v5, %v71_v7 }
  0x1b   :  { %v73_v9 = vadd.f32 %v172_v5, %v72_v8 }
  0x1d   :  { %v75_v13 = vsel %vm74_vm1, %v172_v5, %v73_v9 }
  0x82   :  { %v68_v10 = vpop.xlane.xlu0 %67 }
  0x83   :  { %v76_v16 = vmul.f32 %v75_v13, %v68_v10 }
  0x85   :  { %v82_v18 = vmul.f32 %v76_v16, %v76_v16 }
  0x8a   :  { %v80_v17 = vpop.xlane.xlu0 %79 }
  0x8b   :  { %v81_v19 = vmul.f32 %v80_v17, %v75_v13 }
  0x8d   :  { %v83_v20 = vsub.f32 %v81_v19, %v82_v18 }
  0x8f   :  { %v84_v21 = vmax.f32 %v83_v20, 0.0 }
  0x91   :  { %v85_v22 = vadd.f32 1e-05, %v84_v21 }
  0x93   :  { %173 = vrsqrt.f32 %v85_v22  ;;  %vm92_vm3 = vweird.f32 %v85_v22 }
  0x99   :  { %v174_v23 = vpop.eup %173 }
  0x9a   :  { %v87_v24 = vmul.f32 %v174_v23, %v85_v22  ;;  %vm93_vm2 = vweird.f32 %v174_v23 }
  0x9b   :  { %vm94_vm4 = vmor %vm92_vm3, %vm93_vm2 }
  0x9c   :  { %v88_v25 = vmul.f32 %v174_v23, %v87_v24 }
  0x9e   :  { %v89_v26 = vmul.f32 0.5, %v88_v25 }
  0xa0   :  { %v90_v27 = vsub.f32 1.5, %v89_v26 }
  0xa2   :  { %v91_v29 = vmul.f32 %v174_v23, %v90_v27 }
  0xa4   :  { %v95_v30 = vsel %vm94_vm4, %v174_v23, %v91_v29 }
  0xa5   :  { %v101_v31 = vmul.f32 %v168_v28, %v95_v30  ;;  %v102_v32 = vmul.f32 %v95_v30, %v76_v16 }
  0xa7   :  { %v103_v34 = vmul.f32 %v168_v28, %v102_v32  ;;  %v108_v36 = vmul.f32 %v101_v31, %v64_v0 }
  0xa9   :  { %v107_v35 = vsub.f32 %v169_v33, %v103_v34 }
  0xab   :  { %v109_v37 = vadd.f32 %v108_v36, %v107_v35 }
  0xad   :  { %160 = vmatmul.msk.f32.vlgmr.msra.gmra.mxu0 %vm65_vm0, %v109_v37 }
 0x12a   :  { %v138_v39 = vpop.f32.mrf.mxu0 }
 0x12b   :  { %v139_v40 = vadd.f32 %v170_v38, %v138_v39 }
 0x12d   :  { %141 = vst [vmem:[#allocation8] sm:$0xff] %v139_v40 }
 0x12e   :  { %152 = dma.vmem_to_hbm [thread:$0]  %s148_s12, 128, %s150_s15, [#allocation4]  }
 0x12f   :  { %275 = dma.done.wait [#allocation4], 128  }
 0x130   :  { %276 = vsyncadd [#allocation4], 4294967168 }
 0x131   :  { %157 = vsyncpa [#allocation3], 1 }
 0x132   :  { %158 = vsyncpa [#allocation6], 1 }
 0x133   :  { %159 = vsyncpa [#allocation4], 1 }

// kernel: tpu_custom_call.1
= control target key start
LH: loop header
LB: loop body
LE: loop exit
PB: predicated region body
PF: predicated region fallthrough
CT: control target
= control target key end

     0   :  { %10 = vsyncpa [#allocation3], 0  ;;  %s335_s0 = inlined_call_operand.hbm [shape: f32[8,32], index: 0, kind: input, shape index: {}]   ;;  %s336_s1 = inlined_call_operand.hbm [shape: f32[1,32], index: 1, kind: input, shape index: {}]   ;;  %s337_s2 = inlined_call_operand.vmem [shape: f32[1,32], index: 2, kind: input, shape index: {}]   ;;  %s338_s3 = inlined_call_operand.hbm [shape: f32[32,128], index: 3, kind: input, shape index: {}]   ;;  %s339_s4 = inlined_call_operand.vmem [shape: f32[1,128], index: 4, kind: input, shape index: {}]   ;;  %s340_s5 = inlined_call_operand.hbm [shape: f32[8,128], index: 5, kind: output, shape index: {}]  }
   0x1   :  { %11 = vsyncpa [#allocation6], 0  ;;  %s29_s20 = sshll.u32 %s336_s1, 4  ;;  %s30_s20 = int_to_ptr.hbm [resolvable:$true] %s29_s20 }
   0x2   :  { %12 = vsyncpa [#allocation4], 0  ;;  %s277_s21 = smov [#allocation5]   ;;  %s18_s25 = sshll.u32 %s335_s0, 4  ;;  %s19_s25 = int_to_ptr.hbm [resolvable:$true] %s18_s25 }
   0x3   :  { %s31_s22 = sshll.u32 %s277_s21, 4  ;;  %s278_s26 = smov [#allocation2]   ;;  %s32_s22 = int_to_ptr.vmem [resolvable:$true] %s31_s22 }
   0x4   :  { %34 = dma.hbm_to_vmem [thread:$0]  %s30_s20, 16, %s32_s22, [#allocation6]  }
   0x5   :  { %s20_s27 = sshll.u32 %s278_s26, 4  ;;  %s41_s30 = sshll.u32 %s338_s3, 4  ;;  %s21_s27 = int_to_ptr.vmem [resolvable:$true] %s20_s27  ;;  %s42_s30 = int_to_ptr.hbm [resolvable:$true] %s41_s30 }
   0x6   :  { %23 = dma.hbm_to_vmem [thread:$0]  %s19_s25, 128, %s21_s27, [#allocation3]  }
   0x7   :  { %s279_s1 = smov [#allocation7]   ;;  %s280_s7 = smov 128  }
   0x8   :  { %s43_s6 = sshll.u32 %s279_s1, 4  ;;  %s281_s8 = smov 8   ;;  %s44_s6 = int_to_ptr.vmem [resolvable:$true] %s43_s6 }
   0x9   :  { %49 = dma.hbm_to_vmem [thread:$0]  %s42_s30, 512, %s44_s6, [#allocation6], %s280_s7, %s280_s7, %s281_s8  }
   0xa   :  { %271 = dma.done.wait [#allocation3], 128  }
   0xb   :  { %272 = vsyncadd [#allocation3], 4294967168 }
   0xc   :  { %273 = dma.done.wait [#allocation6], 528  }
   0xd   :  { %274 = vsyncadd [#allocation6], 4294966768  ;;  %vm65_vm0 = vcmask 261120   ;;  %v64_v0 = vld [vmem:[#allocation2] sm:$0xff]  ;;  %v282_v4 = vmov 32.0   ;;  %v111_v14 = vld [vmem:[#allocation7 + $0x8] sm:$0xff] }
   0xe   :  { %v66_v1 = vsel %vm65_vm0, %v64_v0, 0.0  ;;  %v77_v2 = vmul.f32 %v64_v0, %v64_v0  ;;  %171 = vrcp.f32 %v282_v4  ;;  %v113_v11 = vld [vmem:[#allocation7 + $0x18] sm:$0xff]  ;;  %v112_v12 = vld [vmem:[#allocation7 + $0x10] sm:$0xff]  ;;  %v110_v15 = vld [vmem:[#allocation7] sm:$0xff]  ;;  %s283_s11 = smov [#allocation8]   ;;  %s149_s15 = sshll.u32 %s340_s5, 4  ;;  %s150_s15 = int_to_ptr.hbm [resolvable:$true] %s149_s15 }
   0xf   :  { %67 = vadd.xlane.f32.xlu0 %v66_v1  ;;  %133 = vmatpush.msra.mxu0 %v113_v11  ;;  %v168_v28 = vld [vmem:[#allocation5] ss:$0 sm:$0xff]  ;;  %v169_v33 = vld [vmem:[%s337_s2] ss:$0 sm:$0xff]  ;;  %s147_s12 = sshll.u32 %s283_s11, 4  ;;  %s148_s12 = int_to_ptr.vmem [resolvable:$true] %s147_s12 }
  0x10   :  { %v78_v3 = vsel %vm65_vm0, %v77_v2, 0.0  ;;  %v170_v38 = vld [vmem:[%s339_s4] ss:$0 sm:$0xff] }
  0x11   :  { %134 = vmatpush.msra.mxu0 %v112_v12 }
  0x13   :  { %135 = vmatpush.msra.mxu0 %v111_v14 }
  0x14   :  { %v172_v5 = vpop.eup %171 }
  0x15   :  { %v70_v6 = vmul.f32 32.0, %v172_v5  ;;  %vm74_vm1 = vweird.f32 %v172_v5  ;;  %136 = vmatpush.msra.mxu0 %v110_v15 }
  0x17   :  { %79 = vadd.xlane.f32.xlu0 %v78_v3  ;;  %v71_v7 = vsub.f32 1.0, %v70_v6 }
  0x19   :  { %v72_v8 = vmul.f32 %v172_v5, %v71_v7 }
  0x1b   :  { %v73_v9 = vadd.f32 %v172_v5, %v72_v8 }
  0x1d   :  { %v75_v13 = vsel %vm74_vm1, %v172_v5, %v73_v9 }
  0x82   :  { %v68_v10 = vpop.xlane.xlu0 %67 }
  0x83   :  { %v76_v16 = vmul.f32 %v75_v13, %v68_v10 }
  0x85   :  { %v82_v18 = vmul.f32 %v76_v16, %v76_v16 }
  0x8a   :  { %v80_v17 = vpop.xlane.xlu0 %79 }
  0x8b   :  { %v81_v19 = vmul.f32 %v80_v17, %v75_v13 }
  0x8d   :  { %v83_v20 = vsub.f32 %v81_v19, %v82_v18 }
  0x8f   :  { %v84_v21 = vmax.f32 %v83_v20, 0.0 }
  0x91   :  { %v85_v22 = vadd.f32 1e-05, %v84_v21 }
  0x93   :  { %173 = vrsqrt.f32 %v85_v22  ;;  %vm92_vm3 = vweird.f32 %v85_v22 }
  0x99   :  { %v174_v23 = vpop.eup %173 }
  0x9a   :  { %v87_v24 = vmul.f32 %v174_v23, %v85_v22  ;;  %vm93_vm2 = vweird.f32 %v174_v23 }
  0x9b   :  { %vm94_vm4 = vmor %vm92_vm3, %vm93_vm2 }
  0x9c   :  { %v88_v25 = vmul.f32 %v174_v23, %v87_v24 }
  0x9e   :  { %v89_v26 = vmul.f32 0.5, %v88_v25 }
  0xa0   :  { %v90_v27 = vsub.f32 1.5, %v89_v26 }
  0xa2   :  { %v91_v29 = vmul.f32 %v174_v23, %v90_v27 }
  0xa4   :  { %v95_v30 = vsel %vm94_vm4, %v174_v23, %v91_v29 }
  0xa5   :  { %v101_v31 = vmul.f32 %v168_v28, %v95_v30  ;;  %v102_v32 = vmul.f32 %v95_v30, %v76_v16 }
  0xa7   :  { %v103_v34 = vmul.f32 %v168_v28, %v102_v32  ;;  %v108_v36 = vmul.f32 %v101_v31, %v64_v0 }
  0xa9   :  { %v107_v35 = vsub.f32 %v169_v33, %v103_v34 }
  0xab   :  { %v109_v37 = vadd.f32 %v108_v36, %v107_v35 }
  0xad   :  { %160 = vmatmul.msk.f32.vlgmr.msra.gmra.mxu0 %vm65_vm0, %v109_v37 }
 0x12a   :  { %v138_v39 = vpop.f32.mrf.mxu0 }
 0x12b   :  { %v139_v40 = vadd.f32 %v170_v38, %v138_v39 }
 0x12d   :  { %141 = vst [vmem:[#allocation8] sm:$0xff] %v139_v40 }
 0x12e   :  { %152 = dma.vmem_to_hbm [thread:$0]  %s148_s12, 128, %s150_s15, [#allocation4]  }
 0x12f   :  { %275 = dma.done.wait [#allocation4], 128  }
 0x130   :  { %276 = vsyncadd [#allocation4], 4294967168 }
 0x131   :  { %157 = vsyncpa [#allocation3], 1 }
 0x132   :  { %158 = vsyncpa [#allocation6], 1 }
 0x133   :  { %159 = vsyncpa [#allocation4], 1 }

</bundles_post_ra>
